<compile_context>
chip_gen: v7x
topology: tpu7x:2x2x1
jax: 0.10.0
libtpu: 0.0.40
codegen_flags: <defaults>
</compile_context>

<pallas_src>
import jax
import jax.numpy as jnp
from jax.experimental import pallas as pl
from jax.experimental.pallas import tpu as pltpu


def _dma_passthrough_kernel(x_hbm, o_hbm, sem):
    # Placeholder basenet body: identity, realized as one direct HBM->HBM DMA.
    # No VMEM buffers, no vector loads/stores, no grid iterations.
    cp = pltpu.make_async_copy(x_hbm, o_hbm, sem)
    cp.start()
    cp.wait()


def _passthrough_pallas(x):
    """Materialized identity pass-through as a single HBM->HBM DMA kernel."""
    nbytes = x.size * jnp.dtype(x.dtype).itemsize
    return pl.pallas_call(
        _dma_passthrough_kernel,
        out_shape=jax.ShapeDtypeStruct(x.shape, x.dtype),
        in_specs=[pl.BlockSpec(memory_space=pl.ANY)],   # leave input in HBM
        out_specs=pl.BlockSpec(memory_space=pl.ANY),    # leave output in HBM
        scratch_shapes=[pltpu.SemaphoreType.DMA],       # one DMA completion sem
        cost_estimate=pl.CostEstimate(
            flops=0, transcendentals=0, bytes_accessed=2 * nbytes),
    )(x)


# jit once so the pallas_call is compiled/cached like it would be when the
# wrapper is embedded in a larger model graph.
_passthrough_pallas_jit = jax.jit(_passthrough_pallas)


class WrapperPallas:
    """JAX/Pallas analogue of models/wrappers/wrapper.py::Wrapper.

    The reference module only stores `basenet` and has no parameters or
    compute of its own.  If a basenet callable is provided, it is applied;
    otherwise the wrapper is an identity.  By default the identity costs
    nothing (returns x).  Set exercise_kernel=True to route the identity
    through the explicit HBM->HBM DMA Pallas kernel instead (e.g. for
    framework/bench purposes).
    """

    def __init__(self, basenet=None, args=None, exercise_kernel=False):
        self.basenet = basenet
        self.args = args
        self.exercise_kernel = exercise_kernel

    def forward(self, x, meta=None):
        # Reference forward raises NotImplementedError; we run the only
        # well-defined data path (x -> basenet -> out) instead.
        if self.basenet is not None:
            return self.basenet(x)
        if self.exercise_kernel:
            return _passthrough_pallas_jit(x)
        # Fastest correct identity: no kernel launch, zero HBM traffic.
        return x

    __call__ = forward


if __name__ == "__main__":
    key = jax.random.PRNGKey(0)
    x = jax.random.normal(key, (2, 4, 16, 16), dtype=jnp.float32)  # NCHW
    meta = {"id": 0}  # unused, mirrors the (x, meta) signature

    # 1) Exercise the Pallas HBM->HBM DMA pass-through kernel on TPU.
    model_kernel = WrapperPallas(exercise_kernel=True)
    out_kernel = jax.block_until_ready(model_kernel(x, meta))
    assert out_kernel.shape == x.shape and out_kernel.dtype == x.dtype
    assert bool(jnp.array_equal(out_kernel, x))

    # 2) Default (recommended) path: zero-cost identity, no kernel launch.
    model_fast = WrapperPallas()
    out_fast = jax.block_until_ready(model_fast(x, meta))
    assert out_fast.shape == x.shape and out_fast.dtype == x.dtype
    assert bool(jnp.array_equal(out_fast, x))

    print("KERNEL_OK")
</pallas_src>

<mosaic_0001>
module attributes {stable_mosaic.version = 11 : i64} {
  func.func @_dma_passthrough_kernel(%arg0: memref<2x4x16x16xf32, #tpu.memory_space<any>>, %arg1: memref<2x4x16x16xf32, #tpu.memory_space<any>>, %arg2: memref<!tpu.dma_semaphore, #tpu.memory_space<semaphore_mem>>) attributes {dimension_semantics = [], scalar_prefetch = 0 : i64, scratch_operands = 1 : i64, tpu.core_type = #tpu.core_type<tc>} {
    tpu.enqueue_dma source(%arg0 : memref<2x4x16x16xf32, #tpu.memory_space<any>>) target(%arg1 : memref<2x4x16x16xf32, #tpu.memory_space<any>>) target_semaphore(%arg2 : memref<!tpu.dma_semaphore, #tpu.memory_space<semaphore_mem>>)
    tpu.wait_dma2 semaphore(%arg2 : memref<!tpu.dma_semaphore, #tpu.memory_space<semaphore_mem>>) src(%arg0 : memref<2x4x16x16xf32, #tpu.memory_space<any>>) dst(%arg1 : memref<2x4x16x16xf32, #tpu.memory_space<any>>)
    return
  }
}

</mosaic_0001>

<bundles_post_ra>
// kernel: _passthrough_pallas.1
= control target key start
LH: loop header
LB: loop body
LE: loop exit
PB: predicated region body
PF: predicated region fallthrough
CT: control target
= control target key end

     0   :  { %s36_s6 = smov [#allocation2]   ;;  %s37_s7 = smov [#allocation3]   ;;  %s55_s0 = inlined_call_operand.hbm [shape: f32[2,4,16,16], index: 0, kind: input, shape index: {}]   ;;  %s56_s1 = inlined_call_operand.hbm [shape: f32[2,4,16,16], index: 1, kind: output, shape index: {}]  }
   0x1   :  { %s38_s8 = smov 0  }
   0x2   :  { %18 = dma.general %s55_s0, 2048, %s56_s1, %s36_s6, %s37_s7, [#allocation4], %s38_s8, 0  }
   0x3   :  { %34 = dma.done.wait [#allocation2], 2048 }
   0x4   :  { %35 = vsyncadd [#allocation2], 4294965248 }
   0x5   :  { %24 = vsyncmov [#allocation2] }
   0x8   :  { %s25_s13 = vpop.sfrf %24 }
   0x9   :  { %p30_p0 = scmp.ne.s32.totalorder %s25_s13, 0 }
   0xb   :  { %29 = shalt.err (%p30_p0)  }

</bundles_post_ra>
